<compile_context>
chip_gen: v7x
topology: tpu7x:2x2x1
jax: 0.10.0
libtpu: 0.0.40
codegen_flags: <defaults>
</compile_context>

<pallas_src>
import math
import numpy as np

import jax
import jax.numpy as jnp
from jax import lax
from jax.experimental import pallas as pl
from jax.experimental.pallas import tpu as pltpu


def _choose_tile(n, target, mult):
    """Largest tile <= target that divides n and is a multiple of `mult`,
    else the full extent (always a legal block size)."""
    if n <= target:
        return n
    t = (target // mult) * mult
    while t >= mult:
        if n % t == 0:
            return t
        t -= mult
    return n


def _nbytes(shape, dtype):
    return int(np.prod(shape)) * jnp.dtype(dtype).itemsize


def _mk_params(sems, est_bytes):
    # Explicit scoped-VMEM limit: raise v5e's 16 MiB default, keep a margin,
    # cap below v7x's 64 MiB physical.
    limit = int(min(56 << 20, max(32 << 20, 2 * est_bytes)))
    return pltpu.CompilerParams(dimension_semantics=sems,
                                vmem_limit_bytes=limit)


# --------------------------------------------------------------------------
# Stage 1: GroupNorm statistics (per batch): mean_c, inv_std_c  -> (B, 2, C)
# --------------------------------------------------------------------------
def _make_gn_stats_kernel(HW, C, G, eps):
    n_per_group = float(HW * (C // G))

    def kernel(x_ref, mg_ref, stats_ref, s_scr, ss_scr):
        t = pl.program_id(1)

        @pl.when(t == 0)
        def _init():
            s_scr[...] = jnp.zeros_like(s_scr)
            ss_scr[...] = jnp.zeros_like(ss_scr)

        x = x_ref[0].astype(jnp.float32)                       # (TS, C)
        # Sublane reductions (VPU/XLU), keep the MXU free for attention.
        s_scr[...] += jnp.sum(x, axis=0, keepdims=True)        # (1, C)
        ss_scr[...] += jnp.sum(x * x, axis=0, keepdims=True)   # (1, C)

        @pl.when(t == pl.num_programs(1) - 1)
        def _finalize():
            mg = mg_ref[...]                                   # (C, C) same-group 0/1 mask
            mean_c = jnp.dot(s_scr[...], mg,
                             preferred_element_type=jnp.float32) / n_per_group
            msq_c = jnp.dot(ss_scr[...], mg,
                            preferred_element_type=jnp.float32) / n_per_group
            var_c = jnp.maximum(msq_c - mean_c * mean_c, 0.0)  # clamp cancellation
            inv_c = lax.rsqrt(var_c + eps)
            stats_ref[0, 0:1, :] = mean_c
            stats_ref[0, 1:2, :] = inv_c

    return kernel


# --------------------------------------------------------------------------
# Stage 2: GroupNorm apply + fused K/V projection; K emitted transposed
# --------------------------------------------------------------------------
def _make_kv_kernel(C):
    def kernel(x_ref, stats_ref, gb_ref, wkv_ref, bkv_ref, kt_ref, v_ref):
        x = x_ref[0].astype(jnp.float32)                       # (TS, C)
        mean = stats_ref[0, 0:1, :]                            # (1, C)
        inv = stats_ref[0, 1:2, :]                             # (1, C)
        gamma = gb_ref[0:1, :]
        beta = gb_ref[1:2, :]
        h = ((x - mean) * inv * gamma + beta).astype(jnp.bfloat16)
        kv = jnp.dot(h, wkv_ref[...],
                     preferred_element_type=jnp.float32) + bkv_ref[...]   # (TS, 2C) f32
        k = kv[:, 0 * C:1 * C].astype(jnp.bfloat16)            # (TS, C)
        kt_ref[0] = k.T                                        # (C, TS) pre-transposed
        v_ref[0] = kv[:, 1 * C:2 * C].astype(jnp.bfloat16)     # (TS, C)

    return kernel


# --------------------------------------------------------------------------
# Stage 3: fused Q projection + flash attention + output projection + residual
# --------------------------------------------------------------------------
def _make_flash_kernel(C):
    def kernel(x_ref, stats_ref, gb_ref, wq_ref, bq_ref, kt_ref, v_ref,
               wp_ref, bp_ref, o_ref, q_scr, m_scr, l_scr, acc_scr):
        kv = pl.program_id(2)

        @pl.when(kv == 0)
        def _init():
            # Fused Q projection (softmax scale folded into wq/bq in wrapper).
            x = x_ref[0].astype(jnp.float32)                   # (TQ, C)
            mean = stats_ref[0, 0:1, :]
            inv = stats_ref[0, 1:2, :]
            gamma = gb_ref[0:1, :]
            beta = gb_ref[1:2, :]
            h = ((x - mean) * inv * gamma + beta).astype(jnp.bfloat16)
            q_scr[...] = (jnp.dot(h, wq_ref[...],
                                  preferred_element_type=jnp.float32)
                          + bq_ref[...]).astype(jnp.bfloat16)  # (TQ, C)
            m_scr[...] = jnp.full_like(m_scr, -jnp.inf)
            l_scr[...] = jnp.zeros_like(l_scr)
            acc_scr[...] = jnp.zeros_like(acc_scr)

        # logits: (TQ, C) @ (C, TK), bf16 in / f32 acc; scale already folded.
        s = jnp.dot(q_scr[...], kt_ref[0],
                    preferred_element_type=jnp.float32)        # (TQ, TK)

        m_prev = m_scr[...]
        m_new = jnp.maximum(m_prev, jnp.max(s, axis=-1, keepdims=True))
        alpha = jnp.exp(m_prev - m_new)
        p = jnp.exp(s - m_new)                                 # f32 softmax math
        l_scr[...] = alpha * l_scr[...] + jnp.sum(p, axis=-1, keepdims=True)
        acc_scr[...] = alpha * acc_scr[...] + jnp.dot(
            p.astype(jnp.bfloat16), v_ref[0], preferred_element_type=jnp.float32)
        m_scr[...] = m_new

        @pl.when(kv == pl.num_programs(2) - 1)
        def _finalize():
            attn = (acc_scr[...] * pl.reciprocal(l_scr[...], approx=True)
                    ).astype(jnp.bfloat16)                     # (TQ, C)
            out = jnp.dot(attn, wp_ref[...],
                          preferred_element_type=jnp.float32) + bp_ref[...]
            o_ref[0] = (x_ref[0].astype(jnp.float32) + out).astype(o_ref.dtype)

    return kernel


# --------------------------------------------------------------------------
# Wrapper
# --------------------------------------------------------------------------
def attn_block_pallas(x_nchw, params, n_groups, eps=1e-5,
                      q_tile=512, kv_tile=512, hw_tile=512):
    """x_nchw: (B, C, H, W) float32. Returns (B, C, H, W)."""
    B, C, H, W = x_nchw.shape
    HW = H * W
    G = n_groups
    assert C % G == 0

    x_seq = jnp.transpose(x_nchw, (0, 2, 3, 1)).reshape(B, HW, C)

    TS = _choose_tile(HW, hw_tile, 128)  # spatial tile (also lane dim of K^T)
    TQ = _choose_tile(HW, q_tile, 16)    # query tile (bf16 sublane packing)
    TK = _choose_tile(HW, kv_tile, 128)  # key/value tile (lane dim of K^T)
    if B == 1 and TQ >= HW and HW >= 32:
        # Keep >= 2 q tiles so both v7x TensorCores have work at batch 1.
        TQ = _choose_tile(HW, HW // 2, 16)

    scale = float(C) ** (-0.5)

    # same-group 0/1 mask (C, C): group-sum of per-channel stats via one tiny dot
    groups = np.repeat(np.arange(G), C // G)
    m_group = jnp.asarray((groups[:, None] == groups[None, :]).astype(np.float32))

    # fused K/V: weights (C_out, C_in) -> (C_in, 2*C_out) bf16; biases (1, 2C) f32
    wkv = jnp.concatenate([params["wk"].T, params["wv"].T],
                          axis=1).astype(jnp.bfloat16)                      # (C, 2C)
    bkv = jnp.concatenate([params["bk"], params["bv"]]
                          ).reshape(1, 2 * C).astype(jnp.float32)
    # Q weights with the softmax scale folded in (before bf16 cast).
    wq = (params["wq"].T * scale).astype(jnp.bfloat16)                      # (C, C)
    bq = (params["bq"] * scale).reshape(1, C).astype(jnp.float32)
    wp = params["wp"].T.astype(jnp.bfloat16)                                # (C, C)
    bp = params["bp"].reshape(1, C).astype(jnp.float32)
    gb = jnp.stack([params["gamma"], params["beta"]], axis=0
                   ).astype(jnp.float32)                                    # (2, C)

    # ---- stage 1: GroupNorm statistics ----
    est1 = 2 * (_nbytes((TS, C), jnp.float32) + _nbytes((C, C), jnp.float32)
                + _nbytes((2, C), jnp.float32)) + 2 * _nbytes((1, C), jnp.float32)
    stats = pl.pallas_call(
        _make_gn_stats_kernel(HW, C, G, eps),
        out_shape=jax.ShapeDtypeStruct((B, 2, C), jnp.float32),
        grid_spec=pltpu.PrefetchScalarGridSpec(
            num_scalar_prefetch=0,
            grid=(B, HW // TS),
            in_specs=[
                pl.BlockSpec((1, TS, C), lambda b, t: (b, t, 0)),   # x
                pl.BlockSpec((C, C), lambda b, t: (0, 0)),          # group mask
            ],
            out_specs=pl.BlockSpec((1, 2, C), lambda b, t: (b, 0, 0)),
            scratch_shapes=[pltpu.VMEM((1, C), jnp.float32),
                            pltpu.VMEM((1, C), jnp.float32)]),
        compiler_params=_mk_params(("parallel", "arbitrary"), est1),
    )(x_seq, m_group)

    # ---- stage 2: normalize + fused K/V projection (K emitted transposed) ----
    est2 = 2 * (_nbytes((TS, C), jnp.float32) + _nbytes((2, C), jnp.float32)
                + _nbytes((2, C), jnp.float32) + _nbytes((C, 2 * C), jnp.bfloat16)
                + _nbytes((1, 2 * C), jnp.float32)
                + 2 * _nbytes((TS, C), jnp.bfloat16))
    k_t, v = pl.pallas_call(
        _make_kv_kernel(C),
        out_shape=(jax.ShapeDtypeStruct((B, C, HW), jnp.bfloat16),   # K^T
                   jax.ShapeDtypeStruct((B, HW, C), jnp.bfloat16)),  # V
        grid_spec=pltpu.PrefetchScalarGridSpec(
            num_scalar_prefetch=0,
            grid=(B, HW // TS),
            in_specs=[
                pl.BlockSpec((1, TS, C), lambda b, t: (b, t, 0)),   # x
                pl.BlockSpec((1, 2, C), lambda b, t: (b, 0, 0)),    # stats (mean, inv)
                pl.BlockSpec((2, C), lambda b, t: (0, 0)),          # gamma/beta
                pl.BlockSpec((C, 2 * C), lambda b, t: (0, 0)),      # wkv (bf16)
                pl.BlockSpec((1, 2 * C), lambda b, t: (0, 0)),      # bkv
            ],
            out_specs=(pl.BlockSpec((1, C, TS), lambda b, t: (b, 0, t)),
                       pl.BlockSpec((1, TS, C), lambda b, t: (b, t, 0)))),
        compiler_params=_mk_params(("parallel", "parallel"), est2),
    )(x_seq, stats, gb, wkv, bkv)

    # ---- stage 3: fused Q proj + flash attention + output proj + residual ----
    est3 = (2 * (_nbytes((TQ, C), jnp.float32)            # x
                 + _nbytes((2, C), jnp.float32)            # stats
                 + _nbytes((2, C), jnp.float32)            # gb
                 + 2 * _nbytes((C, C), jnp.bfloat16)       # wq, wp
                 + 2 * _nbytes((1, C), jnp.float32)        # bq, bp
                 + 2 * _nbytes((TK, C), jnp.bfloat16)      # k_t, v
                 + _nbytes((TQ, C), jnp.float32))          # out
            + _nbytes((TQ, C), jnp.bfloat16)               # q scratch
            + 2 * _nbytes((TQ, 1), jnp.float32)            # m, l
            + _nbytes((TQ, C), jnp.float32))               # acc
    out_seq = pl.pallas_call(
        _make_flash_kernel(C),
        out_shape=jax.ShapeDtypeStruct((B, HW, C), x_seq.dtype),
        grid_spec=pltpu.PrefetchScalarGridSpec(
            num_scalar_prefetch=0,
            grid=(B, HW // TQ, HW // TK),
            in_specs=[
                pl.BlockSpec((1, TQ, C), lambda b, qi, ki: (b, qi, 0)),  # x (residual + q src)
                pl.BlockSpec((1, 2, C), lambda b, qi, ki: (b, 0, 0)),    # stats
                pl.BlockSpec((2, C), lambda b, qi, ki: (0, 0)),          # gamma/beta
                pl.BlockSpec((C, C), lambda b, qi, ki: (0, 0)),          # wq (bf16, scaled)
                pl.BlockSpec((1, C), lambda b, qi, ki: (0, 0)),          # bq (scaled)
                pl.BlockSpec((1, C, TK), lambda b, qi, ki: (b, 0, ki)),  # K^T
                pl.BlockSpec((1, TK, C), lambda b, qi, ki: (b, ki, 0)),  # V
                pl.BlockSpec((C, C), lambda b, qi, ki: (0, 0)),          # wp (bf16)
                pl.BlockSpec((1, C), lambda b, qi, ki: (0, 0)),          # bp
            ],
            out_specs=pl.BlockSpec((1, TQ, C), lambda b, qi, ki: (b, qi, 0)),
            scratch_shapes=[pltpu.VMEM((TQ, C), jnp.bfloat16),  # q
                            pltpu.VMEM((TQ, 1), jnp.float32),   # running max m
                            pltpu.VMEM((TQ, 1), jnp.float32),   # running denom l
                            pltpu.VMEM((TQ, C), jnp.float32)]), # acc
        compiler_params=_mk_params(("parallel", "parallel", "arbitrary"), est3),
    )(x_seq, stats, gb, wq, bq, k_t, v, wp, bp)

    return jnp.transpose(out_seq.reshape(B, H, W, C), (0, 3, 1, 2))


# --------------------------------------------------------------------------
# Parameter init mirroring the PyTorch module, and a pure-JAX reference
# --------------------------------------------------------------------------
def init_params(key, C):
    """xavier_uniform (gain=1) for q/k/v, xavier_uniform (gain=1e-5) for proj,
    zero biases, GroupNorm affine = (ones, zeros)."""
    def xavier(k, gain):
        bound = gain * math.sqrt(6.0 / (C + C))
        return jax.random.uniform(k, (C, C), jnp.float32, -bound, bound)

    kq, kk, kv, kp = jax.random.split(key, 4)
    return {
        "gamma": jnp.ones((C,), jnp.float32),
        "beta": jnp.zeros((C,), jnp.float32),
        "wq": xavier(kq, 1.0), "bq": jnp.zeros((C,), jnp.float32),
        "wk": xavier(kk, 1.0), "bk": jnp.zeros((C,), jnp.float32),
        "wv": xavier(kv, 1.0), "bv": jnp.zeros((C,), jnp.float32),
        "wp": xavier(kp, 1e-5), "bp": jnp.zeros((C,), jnp.float32),
    }


def attn_block_ref(x_nchw, params, n_groups, eps=1e-5):
    """Pure-JAX reference (same math as the PyTorch forward)."""
    B, C, H, W = x_nchw.shape
    G = n_groups
    xg = x_nchw.reshape(B, G, C // G, H, W)
    mean = jnp.mean(xg, axis=(2, 3, 4), keepdims=True)
    var = jnp.var(xg, axis=(2, 3, 4), keepdims=True)
    h = ((xg - mean) / jnp.sqrt(var + eps)).reshape(B, C, H, W)
    h = h * params["gamma"][None, :, None, None] + params["beta"][None, :, None, None]

    def conv1x1(t, w, b):  # w: (C_out, C_in)
        return jnp.einsum("bchw,oc->bohw", t, w) + b[None, :, None, None]

    q = conv1x1(h, params["wq"], params["bq"])
    k = conv1x1(h, params["wk"], params["bk"])
    v = conv1x1(h, params["wv"], params["bv"])
    q = q.transpose(0, 2, 3, 1).reshape(B, H * W, C)
    k = k.reshape(B, C, H * W)
    w = jnp.einsum("bqc,bck->bqk", q, k) * (C ** -0.5)
    w = jax.nn.softmax(w, axis=-1)
    v = v.transpose(0, 2, 3, 1).reshape(B, H * W, C)
    hh = jnp.einsum("bqk,bkc->bqc", w, v)
    hh = hh.reshape(B, H, W, C).transpose(0, 3, 1, 2)
    hh = conv1x1(hh, params["wp"], params["bp"])
    return x_nchw + hh


if __name__ == "__main__":
    B, C, H, W = 2, 16, 16, 16      # HW = 256
    n_groups = 4

    key = jax.random.PRNGKey(0)
    kx, kp = jax.random.split(key)
    x = jax.random.normal(kx, (B, C, H, W), jnp.float32)
    params = init_params(kp, C)

    # 128-wide tiles over HW=256 exercise multi-tile stats accumulation and the
    # online-softmax KV loop (2 q-tiles x 2 kv-tiles).
    out = attn_block_pallas(x, params, n_groups,
                            q_tile=128, kv_tile=128, hw_tile=128)
    out = jax.block_until_ready(out)
    ref = attn_block_ref(x, params, n_groups)
    np.testing.assert_allclose(np.asarray(out), np.asarray(ref),
                               atol=1e-4, rtol=1e-4)

    # Second check at default (large) tiles and a non-tiny output projection so
    # the attention path is actually validated (bf16 MXU operands -> looser tol).
    params2 = dict(params)
    params2["wp"] = params["wp"] * 1e5
    out2 = jax.block_until_ready(attn_block_pallas(x, params2, n_groups))
    ref2 = attn_block_ref(x, params2, n_groups)
    np.testing.assert_allclose(np.asarray(out2), np.asarray(ref2),
                               atol=5e-2, rtol=5e-2)

    print("KERNEL_OK")
</pallas_src>

<mosaic_0001>
module attributes {stable_mosaic.version = 11 : i64} {
  func.func @kernel(%arg0: i32, %arg1: i32, %arg2: memref<1x128x16xf32, #tpu.memory_space<vmem>>, %arg3: memref<16x16xf32, #tpu.memory_space<vmem>>, %arg4: memref<1x2x16xf32, #tpu.memory_space<vmem>>, %arg5: memref<1x16xf32, #tpu.memory_space<vmem>>, %arg6: memref<1x16xf32, #tpu.memory_space<vmem>>) attributes {dimension_semantics = [#tpu.dimension_semantics<parallel>, #tpu.dimension_semantics<arbitrary>], iteration_bounds = array<i64: 2, 2>, scalar_prefetch = 0 : i64, scratch_operands = 2 : i64, tpu.core_type = #tpu.core_type<tc>, window_params = [{transform_indices = @transform_0, window_bounds = array<i64: 1, 128, 16>}, {pipeline_mode = #tpu.pipeline_mode<synchronous>, transform_indices = @transform_1, window_bounds = array<i64: 16, 16>}, {transform_indices = @transform_2, window_bounds = array<i64: 1, 2, 16>}]} {
    %c0_i32 = arith.constant 0 : i32
    %0 = arith.cmpi eq, %arg1, %c0_i32 : i32
    %1 = arith.extui %0 : i1 to i32
    %c0_i32_0 = arith.constant 0 : i32
    %2 = arith.cmpi ne, %1, %c0_i32_0 : i32
    scf.if %2 {
      %cst_13 = arith.constant 0.000000e+00 : f32
      %19 = vector.broadcast %cst_13 : f32 to vector<1x16xf32>
      %c0_14 = arith.constant 0 : index
      %c0_15 = arith.constant 0 : index
      %20 = vector.load %arg5[%c0_14, %c0_15] : memref<1x16xf32, #tpu.memory_space<vmem>>, vector<1x16xf32>
      tpu.vector_store %arg5[%c0_14, %c0_15], %19 {strides = array<i32>} : memref<1x16xf32, #tpu.memory_space<vmem>>, vector<1x16xf32>,
      %cst_16 = arith.constant 0.000000e+00 : f32
      %21 = vector.broadcast %cst_16 : f32 to vector<1x16xf32>
      %c0_17 = arith.constant 0 : index
      %c0_18 = arith.constant 0 : index
      %22 = vector.load %arg6[%c0_17, %c0_18] : memref<1x16xf32, #tpu.memory_space<vmem>>, vector<1x16xf32>
      tpu.vector_store %arg6[%c0_17, %c0_18], %21 {strides = array<i32>} : memref<1x16xf32, #tpu.memory_space<vmem>>, vector<1x16xf32>,
    } else {
    }
    %c0 = arith.constant 0 : index
    %c0_1 = arith.constant 0 : index
    %c0_2 = arith.constant 0 : index
    %3 = vector.load %arg2[%c0, %c0_1, %c0_2] : memref<1x128x16xf32, #tpu.memory_space<vmem>>, vector<1x128x16xf32>
    %4 = vector.shape_cast %3 : vector<1x128x16xf32> to vector<128x16xf32>
    %c0_3 = arith.constant 0 : index
    %c0_4 = arith.constant 0 : index
    %5 = vector.load %arg5[%c0_3, %c0_4] : memref<1x16xf32, #tpu.memory_space<vmem>>, vector<1x16xf32>
    %cst = arith.constant dense<0.000000e+00> : vector<16xf32>
    %6 = vector.multi_reduction <add>, %4, %cst [0] : vector<128x16xf32> to vector<16xf32>
    %7 = vector.shape_cast %6 : vector<16xf32> to vector<1x16xf32>
    %8 = arith.addf %5, %7 : vector<1x16xf32>
    %c0_5 = arith.constant 0 : index
    %c0_6 = arith.constant 0 : index
    %9 = vector.load %arg5[%c0_5, %c0_6] : memref<1x16xf32, #tpu.memory_space<vmem>>, vector<1x16xf32>
    tpu.vector_store %arg5[%c0_5, %c0_6], %8 {strides = array<i32>} : memref<1x16xf32, #tpu.memory_space<vmem>>, vector<1x16xf32>,
    %c0_7 = arith.constant 0 : index
    %c0_8 = arith.constant 0 : index
    %10 = vector.load %arg6[%c0_7, %c0_8] : memref<1x16xf32, #tpu.memory_space<vmem>>, vector<1x16xf32>
    %11 = arith.mulf %4, %4 : vector<128x16xf32>
    %cst_9 = arith.constant dense<0.000000e+00> : vector<16xf32>
    %12 = vector.multi_reduction <add>, %11, %cst_9 [0] : vector<128x16xf32> to vector<16xf32>
    %13 = vector.shape_cast %12 : vector<16xf32> to vector<1x16xf32>
    %14 = arith.addf %10, %13 : vector<1x16xf32>
    %c0_10 = arith.constant 0 : index
    %c0_11 = arith.constant 0 : index
    %15 = vector.load %arg6[%c0_10, %c0_11] : memref<1x16xf32, #tpu.memory_space<vmem>>, vector<1x16xf32>
    tpu.vector_store %arg6[%c0_10, %c0_11], %14 {strides = array<i32>} : memref<1x16xf32, #tpu.memory_space<vmem>>, vector<1x16xf32>,
    %c1_i32 = arith.constant 1 : i32
    %16 = arith.cmpi eq, %arg1, %c1_i32 : i32
    %17 = arith.extui %16 : i1 to i32
    %c0_i32_12 = arith.constant 0 : i32
    %18 = arith.cmpi ne, %17, %c0_i32_12 : i32
    scf.if %18 {
      %c0_13 = arith.constant 0 : index
      %c0_14 = arith.constant 0 : index
      %19 = vector.load %arg3[%c0_13, %c0_14] : memref<16x16xf32, #tpu.memory_space<vmem>>, vector<16x16xf32>
      %c0_15 = arith.constant 0 : index
      %c0_16 = arith.constant 0 : index
      %20 = vector.load %arg5[%c0_15, %c0_16] : memref<1x16xf32, #tpu.memory_space<vmem>>, vector<1x16xf32>
      %cst_17 = arith.constant dense<0.000000e+00> : vector<1x16xf32>
      %21 = tpu.matmul %20, %19, %cst_17 {dimension_numbers = #tpu.dot_dimension_numbers<[1], [0], [0], [1], [0, 0, 1, 1], [], []>} : vector<1x16xf32>, vector<16x16xf32>, vector<1x16xf32> -> vector<1x16xf32>
      %cst_18 = arith.constant 1.024000e+03 : f32
      %22 = vector.broadcast %cst_18 : f32 to vector<1x16xf32>
      %23 = arith.divf %21, %22 : vector<1x16xf32>
      %c0_19 = arith.constant 0 : index
      %c0_20 = arith.constant 0 : index
      %24 = vector.load %arg6[%c0_19, %c0_20] : memref<1x16xf32, #tpu.memory_space<vmem>>, vector<1x16xf32>
      %cst_21 = arith.constant dense<0.000000e+00> : vector<1x16xf32>
      %25 = tpu.matmul %24, %19, %cst_21 {dimension_numbers = #tpu.dot_dimension_numbers<[1], [0], [0], [1], [0, 0, 1, 1], [], []>} : vector<1x16xf32>, vector<16x16xf32>, vector<1x16xf32> -> vector<1x16xf32>
      %cst_22 = arith.constant 1.024000e+03 : f32
      %26 = vector.broadcast %cst_22 : f32 to vector<1x16xf32>
      %27 = arith.divf %25, %26 : vector<1x16xf32>
      %28 = arith.mulf %23, %23 : vector<1x16xf32>
      %29 = arith.subf %27, %28 : vector<1x16xf32>
      %cst_23 = arith.constant 0.000000e+00 : f32
      %30 = vector.broadcast %cst_23 : f32 to vector<1x16xf32>
      %31 = arith.maximumf %29, %30 : vector<1x16xf32>
      %cst_24 = arith.constant 9.99999974E-6 : f32
      %32 = vector.broadcast %cst_24 : f32 to vector<1x16xf32>
      %33 = arith.addf %31, %32 : vector<1x16xf32>
      %34 = math.rsqrt %33 : vector<1x16xf32>
      %c0_25 = arith.constant 0 : index
      %c0_26 = arith.constant 0 : index
      %c0_27 = arith.constant 0 : index
      %35 = vector.load %arg4[%c0_25, %c0_26, %c0_27] : memref<1x2x16xf32, #tpu.memory_space<vmem>>, vector<1x1x16xf32>
      %36 = vector.shape_cast %35 : vector<1x1x16xf32> to vector<1x16xf32>
      %37 = vector.shape_cast %23 : vector<1x16xf32> to vector<1x1x16xf32>
      tpu.vector_store %arg4[%c0_25, %c0_26, %c0_27], %37 {strides = array<i32>} : memref<1x2x16xf32, #tpu.memory_space<vmem>>, vector<1x1x16xf32>,
      %c0_28 = arith.constant 0 : index
      %c1 = arith.constant 1 : index
      %c0_29 = arith.constant 0 : index
      %38 = vector.load %arg4[%c0_28, %c1, %c0_29] : memref<1x2x16xf32, #tpu.memory_space<vmem>>, vector<1x1x16xf32>
      %39 = vector.shape_cast %38 : vector<1x1x16xf32> to vector<1x16xf32>
      %40 = vector.shape_cast %34 : vector<1x16xf32> to vector<1x1x16xf32>
      tpu.vector_store %arg4[%c0_28, %c1, %c0_29], %40 {strides = array<i32>} : memref<1x2x16xf32, #tpu.memory_space<vmem>>, vector<1x1x16xf32>,
    } else {
    }
    return
  }
  func.func @transform_0(%arg0: i32, %arg1: i32) -> (i32, i32, i32) {
    %c0_i32 = arith.constant 0 : i32
    %c0_i32_0 = arith.constant 0 : i32
    return %arg0, %arg1, %c0_i32 : i32, i32, i32
  }
  func.func @transform_1(%arg0: i32, %arg1: i32) -> (i32, i32) {
    %c0_i32 = arith.constant 0 : i32
    %c0_i32_0 = arith.constant 0 : i32
    %c0_i32_1 = arith.constant 0 : i32
    return %c0_i32, %c0_i32_0 : i32, i32
  }
  func.func @transform_2(%arg0: i32, %arg1: i32) -> (i32, i32, i32) {
    %c0_i32 = arith.constant 0 : i32
    %c0_i32_0 = arith.constant 0 : i32
    %c0_i32_1 = arith.constant 0 : i32
    return %arg0, %c0_i32, %c0_i32_0 : i32, i32, i32
  }
}

</mosaic_0001>

<bundles_post_ra>
// kernel: tpu_custom_call.1
= control target key start
LH: loop header
LB: loop body
LE: loop exit
PB: predicated region body
PF: predicated region fallthrough
CT: control target
= control target key end

     0   :  { %7 = vsyncpa [#allocation5], 0  ;;  %s981_s0 = inlined_call_operand.vmem [shape: f32[2,256,16], index: 0, kind: input, shape index: {}]   ;;  %s982_s1 = inlined_call_operand.vmem [shape: f32[16,16], index: 1, kind: input, shape index: {}]   ;;  %s983_s2 = inlined_call_operand.hbm [shape: f32[2,2,16], index: 2, kind: output, shape index: {}]  }
   0x1   :  { %9 = vsyncpa [#allocation5 + $0x1], 0  ;;  %s781_s9 = smov 0   ;;  %s783_s10 = smov 0  }
   0x2   :  { %s785_s11 = smov 0   ;;  %s787_s12 = smov 0  }
   0x3   :  { %s789_s13 = smov 0   ;;  %s791_s14 = smov 0  }
   0x4   :  { %s793_s15 = smov 0   ;;  %s795_s16 = smov 0  }
   0x5 LB: > { %s545_s17 = sadd.s32 4294967295, %s759_s16   ;;  %s546_s18 = sadd.s32 4294967294, %s759_s16   ;;  %s759_s16 = sphi %s795_s16, %s15_s16   ;;  %s755_s15 = sphi %s793_s15, %s992_s15   ;;  %s751_s14 = sphi %s791_s14, %s991_s14   ;;  %s747_s13 = sphi %s789_s13, %s990_s13   ;;  %s743_s12 = sphi %s787_s12, %s989_s12   ;;  %s739_s11 = sphi %s785_s11, %s988_s11   ;;  %s735_s10 = sphi %s783_s10, %s987_s10   ;;  %s731_s9 = sphi %s781_s9, %s986_s9  }
   0x6   : > { %s24_s19 = sadd.s32 1, %s751_s14  ;;  %s27_s20 = sadd.s32 1, %s755_s15 }
   0x7   : > { %p25_p0 = scmp.ge.s32.totalorder %s24_s19, 2  ;;  %p93_p1 = scmp.ne.s32.totalorder %s739_s11, %s735_s10 }
   0x8   : > { %p94_p2 = scmp.eq.s32.totalorder %s545_s17, 3  ;;  %p99_p4 = scmp.ne.s32.totalorder %s735_s10, %s731_s9 }
   0x9   : > { %s994_s19 = smov (%p25_p0, %s24_s19), 0  ;;  %s996_s20 = smov (!%p25_p0, %s27_s20), %s755_s15 }
   0xa   : > { %p830_p3 = por %p94_p2, %p93_p1  ;;  %p29_p5 = scmp.ge.s32.totalorder %s996_s20, 2 }
   0xb   : > { %p100_p6 = scmp.eq.s32.totalorder %s546_s18, 3  ;;  %p549_p7 = scmp.ge.s32.totalorder %s759_s16, 1 }
   0xc   : > { %p134_p8 = scmp.lt.s32.totalorder %s759_s16, 5  ;;  %s998_s20 = smov (%p29_p5, %s996_s20), 0 }
   0xd   : > { %p840_p9 = por %p100_p6, %p99_p4  ;;  %s80_s23 = ssub.s32 %s755_s15, %s998_s20 }
   0xe   : > { %p135_p10 = pnand %p549_p7, %p134_p8  ;;  %s83_s24 = sadd.s32 1, %s739_s11 }
   0xf   : > { %p81_p11 = scmp.eq.s32.totalorder %s80_s23, 0  ;;  %s157_s26 = sand.u32 (!%p135_p10), 1, %s735_s10  }
  0x10   : > { %138 = sbr.rel (%p135_p10) target bundleno = 344 (0x158), region = 28  ;;  %s551_s27 = sshll.u32 (!%p135_p10), %s743_s12, 4 }
  0x11   : > { %s848_s25 = scalar_select %p81_p11, %s739_s11, %s83_s24  }
  0x12   : > { %s550_s28 = sshll.u32 (!%p135_p10), %s157_s26, 1  ;;  %p161_p12 = scmp.lt.s32.totalorder (!%p135_p10), %s747_s13, 1 }
  0x13   : > { %p163_p13 = scmp.lt.s32.totalorder (!%p135_p10), %s551_s27, 31  ;;  %s861_s8 = scalar_lea.vmem (!%p135_p10), [#allocation4], %s550_s28 }
  0x14   : > { %p554_p0 = scmp.ne.s32.totalorder (!%p135_p10), %s743_s12, 0 }
  0x17   : > { %s162_s29 = scalar_select %p161_p12, %s747_s13, 1 }
  0x18   : > { %s1000_s27 = smov (!%p163_p13, %s551_s27), 31  ;;  %173 = sbr.rel (%p554_p0) target bundleno = 31 (0x1f), region = 32 }
  0x19   : > { %s552_s30 = sshll.u32 %s162_s29, 5  ;;  %vm174_vm0 = vcmask (!%p554_p0), 122880   ;;  %v761_v0 = vmov (!%p554_p0), 0.0  }
  0x1a   : > { %s166_s3 = sadd.s32 %s552_s30, %s1000_s27  ;;  %175 = vst.msk [vmem:[#allocation2] sm:$0x1] (!%p554_p0), %vm174_vm0, %v761_v0  ;;  %176 = vst.msk [vmem:[#allocation3] sm:$0x1] (!%p554_p0), %vm174_vm0, %v761_v0 }
  0x1b   : > { %s553_s4 = sshll.u32 %s166_s3, 3 }
  0x1c   : > { %s859_s7 = scalar_lea.vmem %s981_s0, %s553_s4 }
  0x1f PF: > { %v177_v1 = vld [vmem:[%s859_s7] sm:$0xff]  ;;  %v178_v2 = vld [vmem:[%s859_s7 + $0x8] sm:$0xff]  ;;  %v179_v3 = vld [vmem:[%s859_s7 + $0x10] sm:$0xff]  ;;  %vm194_vm1 = vcmask 130048   ;;  %vm233_vm2 = vcmask 122880   ;;  %p555_p1 = scmp.ne.s32.totalorder %s743_s12, 1 }
  0x20   : > { %v195_v4 = vsel %vm194_vm1, %v177_v1, 0.0  ;;  %v196_v5 = vsel %vm194_vm1, %v178_v2, 0.0  ;;  %v198_v6 = vsel %vm194_vm1, %v179_v3, 0.0  ;;  %v180_v7 = vld [vmem:[%s859_s7 + $0x18] sm:$0xff]  ;;  %v181_v10 = vld [vmem:[%s859_s7 + $0x20] sm:$0xff]  ;;  %v182_v13 = vld [vmem:[%s859_s7 + $0x28] sm:$0xff]  ;;  %v236_v15 = vmul.f32 %v177_v1, %v177_v1 }
  0x21   : > { %v197_v8 = vadd.f32 %v196_v5, %v195_v4  ;;  %v200_v9 = vsel %vm194_vm1, %v180_v7, 0.0  ;;  %v202_v12 = vsel %vm194_vm1, %v181_v10, 0.0  ;;  %v237_v16 = vmul.f32 %v178_v2, %v178_v2  ;;  %v183_v19 = vld [vmem:[%s859_s7 + $0x30] sm:$0xff]  ;;  %v184_v24 = vld [vmem:[%s859_s7 + $0x38] sm:$0xff]  ;;  %v185_v31 = vld [vmem:[%s859_s7 + $0x40] sm:$0xff] }
  0x22   : > { %v238_v17 = vmul.f32 %v179_v3, %v179_v3  ;;  %v204_v18 = vsel %vm194_vm1, %v182_v13, 0.0  ;;  %v239_v21 = vmul.f32 %v180_v7, %v180_v7  ;;  %v206_v22 = vsel %vm194_vm1, %v183_v19, 0.0  ;;  %v186_v37 = vld [vmem:[%s859_s7 + $0x48] sm:$0xff]  ;;  %v187_v43 = vld [vmem:[%s859_s7 + $0x50] sm:$0xff]  ;;  %v188_v49 = vld [vmem:[%s859_s7 + $0x58] sm:$0xff] }
  0x23   : > { %v199_v11 = vadd.f32 %v198_v6, %v197_v8  ;;  %v240_v23 = vmul.f32 %v181_v10, %v181_v10  ;;  %v252_v26 = vsel %vm194_vm1, %v236_v15, 0.0  ;;  %v253_v27 = vsel %vm194_vm1, %v237_v16, 0.0  ;;  %v189_v55 = vld [vmem:[%s859_s7 + $0x60] sm:$0xff]  ;;  %v190_v61 = vld [vmem:[%s859_s7 + $0x68] sm:$0xff]  ;;  %v191_v3 = vld [vmem:[%s859_s7 + $0x70] sm:$0xff] }
  0x24   : > { %v255_v28 = vsel %vm194_vm1, %v238_v17, 0.0  ;;  %v208_v29 = vsel %vm194_vm1, %v184_v24, 0.0  ;;  %v254_v30 = vadd.f32 %v253_v27, %v252_v26  ;;  %v241_v33 = vmul.f32 %v182_v13, %v182_v13 }
  0x25   : > { %v201_v14 = vadd.f32 %v200_v9, %v199_v11  ;;  %v257_v34 = vsel %vm194_vm1, %v239_v21, 0.0  ;;  %v210_v35 = vsel %vm194_vm1, %v185_v31, 0.0  ;;  %v242_v39 = vmul.f32 %v183_v19, %v183_v19  ;;  %v192_v9 = vld [vmem:[%s859_s7 + $0x78] sm:$0xff] }
  0x26   : > { %v256_v36 = vadd.f32 %v255_v28, %v254_v30  ;;  %v259_v40 = vsel %vm194_vm1, %v240_v23, 0.0  ;;  %v212_v41 = vsel %vm194_vm1, %v186_v37, 0.0  ;;  %v243_v45 = vmul.f32 %v184_v24, %v184_v24 }
  0x27   : > { %v203_v20 = vadd.f32 %v202_v12, %v201_v14  ;;  %v261_v46 = vsel %vm194_vm1, %v241_v33, 0.0  ;;  %v214_v47 = vsel %vm194_vm1, %v187_v43, 0.0  ;;  %v244_v51 = vmul.f32 %v185_v31, %v185_v31 }
  0x28   : > { %v258_v42 = vadd.f32 %v257_v34, %v256_v36  ;;  %v263_v52 = vsel %vm194_vm1, %v242_v39, 0.0  ;;  %v216_v53 = vsel %vm194_vm1, %v188_v49, 0.0  ;;  %v245_v57 = vmul.f32 %v186_v37, %v186_v37  ;;  %v193_v36 = vld [vmem:[#allocation2] sm:$0x1] }
  0x29   : > { %v205_v25 = vadd.f32 %v204_v18, %v203_v20  ;;  %v265_v58 = vsel %vm194_vm1, %v243_v45, 0.0  ;;  %v218_v59 = vsel %vm194_vm1, %v189_v55, 0.0  ;;  %v246_v63 = vmul.f32 %v187_v43, %v187_v43 }
  0x2a   : > { %v260_v48 = vadd.f32 %v259_v40, %v258_v42  ;;  %v267_v0 = vsel %vm194_vm1, %v244_v51, 0.0  ;;  %v220_v1 = vsel %vm194_vm1, %v190_v61, 0.0  ;;  %v247_v5 = vmul.f32 %v188_v49, %v188_v49 }
  0x2b   : > { %v207_v32 = vadd.f32 %v206_v22, %v205_v25  ;;  %v269_v6 = vsel %vm194_vm1, %v245_v57, 0.0  ;;  %v222_v7 = vsel %vm194_vm1, %v191_v3, 0.0  ;;  %v248_v11 = vmul.f32 %v189_v55, %v189_v55 }
  0x2c   : > { %v262_v54 = vadd.f32 %v261_v46, %v260_v48  ;;  %v271_v12 = vsel %vm194_vm1, %v246_v63, 0.0  ;;  %v224_v13 = vsel %vm194_vm1, %v192_v9, 0.0  ;;  %v249_v16 = vmul.f32 %v190_v61, %v190_v61  ;;  %v296_v48 = vld [vmem:[%s982_s1 + $0x8] sm:$0xff] (!%p555_p1) }
  0x2d   : > { %v209_v38 = vadd.f32 %v208_v29, %v207_v32  ;;  %v273_v17 = vsel %vm194_vm1, %v247_v5, 0.0  ;;  %v250_v20 = vmul.f32 %v191_v3, %v191_v3  ;;  %v275_v21 = vsel %vm194_vm1, %v248_v11, 0.0 }
  0x2e   : > { %v264_v60 = vadd.f32 %v263_v52, %v262_v54  ;;  %v251_v24 = vmul.f32 %v192_v9, %v192_v9  ;;  %v277_v25 = vsel %vm194_vm1, %v249_v16, 0.0  ;;  %v762_v49 = vmov (!%p555_p1), 0.0|0.0  }
  0x2f   : > { %v211_v44 = vadd.f32 %v210_v35, %v209_v38  ;;  %v279_v28 = vsel %vm194_vm1, %v250_v20, 0.0  ;;  %582 = vmatprep.subr.bf16.mxu0 (!%p555_p1), %v762_v49  ;;  %585 = vmatprep.subr.bf16.mxu1 (!%p555_p1), %v762_v49  ;;  %vm763_vm3 = vmmov (!%p555_p1), 0   ;;  %v764_v51 = vmov (!%p555_p1), 0.0  }
  0x30   : > { %v266_v2 = vadd.f32 %v265_v58, %v264_v60  ;;  %v281_v31 = vsel %vm194_vm1, %v251_v24, 0.0  ;;  %572 = vmatprep.mubr.msk.f32.mxu0 (!%p555_p1), %vm763_vm3, %v764_v51  ;;  %579 = vmatprep.mubr.msk.f32.mxu1 (!%p555_p1), %vm763_vm3, %v764_v51 }
  0x31   : > { %v213_v50 = vadd.f32 %v212_v41, %v211_v44  ;;  %v235_v44 = vld [vmem:[#allocation3] sm:$0x1] }
  0x32   : > { %v268_v8 = vadd.f32 %v267_v0, %v266_v2 }
  0x33   : > { %v215_v56 = vadd.f32 %v214_v47, %v213_v50  ;;  %v295_v47 = vld [vmem:[%s982_s1] sm:$0xff] (!%p555_p1) }
  0x34   : > { %v270_v14 = vadd.f32 %v269_v6, %v268_v8  ;;  %v583_v50 = vpack.c.bf16 (!%p555_p1), %v296_v48, %v295_v47 }
  0x35   : > { %v217_v62 = vadd.f32 %v216_v53, %v215_v56 }
  0x36   : > { %v272_v18 = vadd.f32 %v271_v12, %v270_v14  ;;  %584 = vmatpush3.bf16.msra.mxu0 (!%p555_p1), %v583_v50  ;;  %587 = vmatpush3.bf16.msra.mxu1 (!%p555_p1), %v583_v50 }
  0x37   : > { %v219_v4 = vadd.f32 %v218_v59, %v217_v62 }
  0x38   : > { %v274_v22 = vadd.f32 %v273_v17, %v272_v18 }
  0x39   : > { %v221_v10 = vadd.f32 %v220_v1, %v219_v4 }
  0x3a   : > { %v276_v26 = vadd.f32 %v275_v21, %v274_v22 }
  0x3b   : > { %v223_v15 = vadd.f32 %v222_v7, %v221_v10 }
  0x3c   : > { %v278_v29 = vadd.f32 %v277_v25, %v276_v26 }
  0x3d   : > { %v225_v19 = vadd.f32 %v224_v13, %v223_v15 }
  0x3e   : > { %v280_v32 = vadd.f32 %v279_v28, %v278_v29 }
  0x3f   : > { %v226_v23 = vrot.slane %v225_v19, 4 }
  0x40   : > { %v282_v34 = vadd.f32 %v281_v31, %v280_v32 }
  0x41   : > { %v227_v27 = vadd.f32 %v226_v23, %v225_v19 }
  0x42   : > { %v283_v37 = vrot.slane %v282_v34, 4 }
  0x43   : > { %v228_v30 = vrot.slane %v227_v27, 2 }
  0x44   : > { %v284_v39 = vadd.f32 %v283_v37, %v282_v34 }
  0x45   : > { %v229_v33 = vadd.f32 %v228_v30, %v227_v27 }
  0x46   : > { %v285_v41 = vrot.slane %v284_v39, 2 }
  0x47   : > { %v230_v35 = vrot.slane %v229_v33, 1 }
  0x48   : > { %v286_v42 = vadd.f32 %v285_v41, %v284_v39 }
  0x49   : > { %v231_v38 = vadd.f32 %v230_v35, %v229_v33 }
  0x4a   : > { %v287_v43 = vrot.slane %v286_v42, 1  ;;  %294 = sbr.rel (%p555_p1) target bundleno = 320 (0x140), region = 36 }
  0x4b   : > { %v232_v40 = vadd.f32 %v231_v38, %v193_v36 }
  0x4c   : > { %v288_v45 = vadd.f32 %v287_v43, %v286_v42 }
  0x4d   : > { %234 = vst.msk [vmem:[#allocation2] sm:$0x1] %vm233_vm2, %v232_v40 }
  0x4e   : > { %v289_v46 = vadd.f32 %v288_v45, %v235_v44 }
  0x50   : > { %290 = vst.msk [vmem:[#allocation3] sm:$0x1] %vm233_vm2, %v289_v46 }
  0x54   : > { %v297_v52 = vld [vmem:[#allocation2] sm:$0x1] }
  0x55   : > { %573 = vmatmul.mubr.msk.f32.vlgmr.msra.gmra.mrb[0].mxu0 %vm194_vm1, %v297_v52 }
  0x57   : > { %v373_v53 = vld [vmem:[#allocation3] sm:$0x1] }
  0x58   : > { %580 = vmatmul.mubr.msk.f32.vlgmr.msra.gmra.mrb[0].mxu1 %vm194_vm1, %v373_v53 }
 0x128   : > { %v367_v54 = vpop.f32.mrb[0].mxu0 }
 0x129   : > { %v372_v56 = vmul.f32 0.0009765625, %v367_v54  ;;  %v574_v57 = vpop.f32.mrb[1].mxu0 }
 0x12b   : > { %v443_v55 = vpop.f32.mrb[0].mxu1  ;;  %v448_v60 = vmul.f32 %v372_v56, %v372_v56  ;;  %453 = vst.msk [vmem:[%s861_s8] sm:$0x1] %vm233_vm2, %v372_v56 }
 0x12c   : > { %v447_v58 = vmul.f32 0.0009765625, %v443_v55  ;;  %v581_v59 = vpop.f32.mrb[1].mxu1 }
 0x12e   : > { %v449_v61 = vsub.f32 %v447_v58, %v448_v60 }
 0x130   : > { %v450_v62 = vmax.f32 %v449_v61, 0.0 }
 0x132   : > { %v451_v63 = vadd.f32 1e-05, %v450_v62 }
 0x134   : > { %663 = vrsqrt.f32 %v451_v63 }
 0x13e   : > { %v664_v0 = vpop.eup %663 }
 0x13f   : > { %454 = vst.msk [vmem:[%s861_s8 + $0x1] sm:$0x1] %vm233_vm2, %v664_v0 }
 0x140 PF: > { %s559_s12 = sshll.u32 %s747_s13, 5  ;;  %s469_s30 = sshll.u32 %s861_s8, 4  ;;  %s470_s30 = int_to_ptr.vmem [resolvable:$true] %s469_s30 }
 0x141   : > { %s931_s29 = scalar_lea.hbm %s983_s2, %s559_s12  ;;  %s456_s3 = scalar_lea.sflag [#allocation5], %s157_s26 }
 0x142   : > { %s665_s4 = scalar_lea.vmem %s470_s30, 32  ;;  %s765_s5 = smov [#allocation4]  }
 0x143   : > { %p666_p2 = scmp.ne.s32.totalorder %s470_s30, %s665_s4  ;;  %s669_s6 = sshll.u32 %s765_s5, 4  ;;  %s670_s6 = int_to_ptr.vmem [resolvable:$false] %s669_s6 }
 0x144   : > { %s671_s7 = scalar_lea.vmem %s670_s6, 64  ;;  %p672_p6 = scmp.lt.s32.totalorder %s470_s30, %s670_s6 }
 0x145   : > { %p667_p4 = pnand %p666_p2, %p830_p3  ;;  %p673_p7 = scmp.lt.s32.totalorder %s671_s7, %s665_s4 }
 0x147   : > { %p668_p5 = pneg %p667_p4  ;;  %p674_p8 = por %p673_p7, %p672_p6 }
 0x149   : > { %p675_p10 = pnand %p674_p8, %p668_p5 }
 0x14b   : > { %678 = shalt.err (!%p675_p10)
}
 0x14c   : > { %s679_s13 = scalar_lea.hbm %s931_s29, 32  ;;  %s683_s17 = scalar_lea.hbm %s983_s2, 64 }
 0x14d   : > { %p680_p11 = scmp.ne.s32.totalorder %s931_s29, %s679_s13  ;;  %p684_p0 = scmp.lt.u32.totalorder %s931_s29, %s983_s2 }
 0x14e   : > { %p685_p1 = scmp.lt.u32.totalorder %s683_s17, %s679_s13  ;;  %p687_p4 = scmp.lt.u32.totalorder %s679_s13, %s931_s29 }
 0x14f   : > { %p681_p12 = pnand %p680_p11, %p830_p3 }
 0x150   : > { %p686_p2 = por %p685_p1, %p684_p0 }
 0x151   : > { %p682_p13 = pneg %p681_p12 }
 0x152   : > { %p688_p5 = por %p687_p4, %p686_p2 }
 0x154   : > { %p689_p6 = pnand %p688_p5, %p682_p13 }
 0x156   : > { %692 = shalt.err (!%p689_p6)
}
 0x157   : > { %588 = dma.vmem_to_hbm [thread:$0]  (%p830_p3), %s470_s30, 32, %s931_s29, %s456_s3  }
 0x158 PF: > { %p594_p7 = scmp.ge.s32.totalorder %s759_s16, 2  ;;  %s481_s24 = sand.u32 1, %s731_s9  }
 0x159   : > { %s482_s12 = scalar_lea.sflag [#allocation5], %s481_s24 }
 0x15a   : > { %p591_p8 = pnand %p594_p7, %p840_p9 }
 0x15c   : > { %726 = dma.done.wait (!%p591_p8), %s482_s12, 32  }
 0x15d   : > { %728 = vsyncadd (!%p591_p8), %s482_s12, 4294967264  ;;  %s15_s16 = sadd.s32 1, %s759_s16   ;;  %s986_s9 = smov %s735_s10 }
 0x15e   : > { %p12_p10 = scmp.ge.s32.totalorder %s15_s16, 6   ;;  %s987_s10 = smov %s739_s11 }
 0x15f   : > { %s988_s11 = smov %s848_s25  ;;  %s989_s12 = smov %s751_s14 }
 0x160   : > { %s990_s13 = smov %s755_s15  ;;  %s991_s14 = smov %s994_s19 }
 0x161   : > { %s992_s15 = smov %s998_s20  ;;  %14 = sbr.rel (!%p12_p10) target bundleno = 5 (0x5), region = 71 }
 0x168   :  { %487 = vsyncpa [#allocation5], 1 }
 0x169   :  { %489 = vsyncpa [#allocation5 + $0x1], 1 }

</bundles_post_ra>
